<compile_context>
chip_gen: v5e
topology: v5e:2x2
jax: 0.10.0
libtpu: 0.0.40
codegen_flags: <defaults>
</compile_context>

<pallas_src>
import functools

import jax
import jax.numpy as jnp
from jax import lax
from jax.experimental import pallas as pl
from jax.experimental.pallas import tpu as pltpu


def _gcn_linear_kernel(n_rows_out, x_ref, w_ref, b_ref, o_ref):
    # relu -> (h @ W^T) on the MXU -> + bias, all on whole VMEM-resident tiles.
    h = jnp.maximum(x_ref[...], 0.0)
    acc = lax.dot_general(
        h, w_ref[...],
        dimension_numbers=(((1,), (1,)), ((), ())),   # contract h dim 1 with W dim 1
        preferred_element_type=jnp.float32,
    )
    # Row-wise ops commute with row slicing: compute on all (sublane-aligned)
    # rows, store only the first n_rows_out (one masked vst on the tail group).
    o_ref[...] = (acc + b_ref[...])[:n_rows_out].astype(o_ref.dtype)


def simple_gcn_forward(x, edge_index, edge_weight, weight, bias):
    """Pallas equivalent of SimpleGCN.forward.

    x:           (N, out_features) float32
    edge_index:  unused (kept for signature parity)
    edge_weight: unused (kept for signature parity)
    weight:      (in_features, out_features) float32   -- nn.Linear weight
    bias:        (in_features,) float32                -- nn.Linear bias
    returns:     (min(N, 27), in_features) float32
    """
    del edge_index, edge_weight  # unused in the reference forward pass

    num_nodes, out_features = x.shape
    in_features = weight.shape[0]
    n_rows_out = min(num_nodes, 27)

    b2d = bias.reshape(1, in_features)  # 2-D for TPU-friendly broadcast

    # Advisory cost hint: ~8K FLOPs, a few KiB of traffic, no transcendentals.
    cost = pl.CostEstimate(
        flops=2 * num_nodes * out_features * in_features,
        transcendentals=0,
        bytes_accessed=4 * (num_nodes * out_features          # x
                            + in_features * out_features      # weight
                            + in_features                     # bias
                            + n_rows_out * in_features),      # output
    )

    return pl.pallas_call(
        functools.partial(_gcn_linear_kernel, n_rows_out),
        out_shape=jax.ShapeDtypeStruct((n_rows_out, in_features), jnp.float32),
        in_specs=[
            pl.BlockSpec(memory_space=pltpu.MemorySpace.VMEM),  # x (whole array)
            pl.BlockSpec(memory_space=pltpu.MemorySpace.VMEM),  # weight
            pl.BlockSpec(memory_space=pltpu.MemorySpace.VMEM),  # bias (1, in_f)
        ],
        out_specs=pl.BlockSpec(memory_space=pltpu.MemorySpace.VMEM),
        cost_estimate=cost,
    )(x, weight, b2d)


if __name__ == "__main__":
    # Module config: SimpleGCN(in_features=8, out_features=16)
    in_features = 8
    out_features = 16
    num_nodes = 32           # sublane-aligned; >= 27 so the [:27] slice is exercised

    key = jax.random.PRNGKey(0)
    kx, kw, kb, ke = jax.random.split(key, 4)

    # nn.Linear(out_features, in_features) parameter shapes:
    #   weight: (in_features, out_features), bias: (in_features,)
    bound = 1.0 / jnp.sqrt(out_features)
    weight = jax.random.uniform(
        kw, (in_features, out_features), jnp.float32, -bound, bound)
    bias = jax.random.uniform(kb, (in_features,), jnp.float32, -bound, bound)

    # Inputs
    x = jax.random.normal(kx, (num_nodes, out_features), jnp.float32)
    edge_index = jnp.zeros((2, 16), jnp.int32)                 # unused by forward
    edge_weight = jax.random.uniform(ke, (16,), jnp.float32)   # unused by forward

    out = simple_gcn_forward(x, edge_index, edge_weight, weight, bias)
    out = jax.block_until_ready(out)

    # Reference check in plain JAX
    ref = jnp.maximum(x[:27], 0.0) @ weight.T + bias
    assert out.shape == (27, in_features)
    assert jnp.allclose(out, ref, atol=1e-5, rtol=1e-5)

    print("KERNEL_OK")
</pallas_src>

<mosaic_0001>
module attributes {stable_mosaic.version = 11 : i64} {
  func.func @_gcn_linear_kernel(%arg0: memref<32x16xf32, #tpu.memory_space<vmem>>, %arg1: memref<8x16xf32, #tpu.memory_space<vmem>>, %arg2: memref<1x8xf32, #tpu.memory_space<vmem>>, %arg3: memref<27x8xf32, #tpu.memory_space<vmem>>) attributes {dimension_semantics = [], scalar_prefetch = 0 : i64, scratch_operands = 0 : i64, tpu.core_type = #tpu.core_type<tc>} {
    %c0 = arith.constant 0 : index
    %c0_0 = arith.constant 0 : index
    %0 = vector.load %arg0[%c0, %c0_0] : memref<32x16xf32, #tpu.memory_space<vmem>>, vector<32x16xf32>
    %cst = arith.constant 0.000000e+00 : f32
    %1 = vector.broadcast %cst : f32 to vector<32x16xf32>
    %2 = arith.maximumf %0, %1 : vector<32x16xf32>
    %c0_1 = arith.constant 0 : index
    %c0_2 = arith.constant 0 : index
    %3 = vector.load %arg1[%c0_1, %c0_2] : memref<8x16xf32, #tpu.memory_space<vmem>>, vector<8x16xf32>
    %cst_3 = arith.constant dense<0.000000e+00> : vector<32x8xf32>
    %4 = tpu.matmul %2, %3, %cst_3 {dimension_numbers = #tpu.dot_dimension_numbers<[1], [1], [0], [0], [0, 0, 1, 0], [], []>} : vector<32x16xf32>, vector<8x16xf32>, vector<32x8xf32> -> vector<32x8xf32>
    %c0_4 = arith.constant 0 : index
    %c0_5 = arith.constant 0 : index
    %5 = vector.load %arg2[%c0_4, %c0_5] : memref<1x8xf32, #tpu.memory_space<vmem>>, vector<1x8xf32>
    %6 = vector.broadcast %5 : vector<1x8xf32> to vector<32x8xf32>
    %7 = arith.addf %4, %6 : vector<32x8xf32>
    %8 = vector.extract_strided_slice %7 {offsets = [0, 0], sizes = [27, 8], strides = [1, 1]} : vector<32x8xf32> to vector<27x8xf32>
    %c0_6 = arith.constant 0 : index
    %c0_7 = arith.constant 0 : index
    %9 = vector.load %arg3[%c0_6, %c0_7] : memref<27x8xf32, #tpu.memory_space<vmem>>, vector<27x8xf32>
    tpu.vector_store %arg3[%c0_6, %c0_7], %8 {strides = array<i32>} : memref<27x8xf32, #tpu.memory_space<vmem>>, vector<27x8xf32>,
    return
  }
}

</mosaic_0001>

<bundles_post_ra>
// kernel: tpu_custom_call.1
= control target key start
LH: loop header
LB: loop body
LE: loop exit
PB: predicated region body
PF: predicated region fallthrough
CT: control target
= control target key end

     0   :  { %vm27_vm0 = vcmask 130048   ;;  %vm72_vm1 = vcmask 64512   ;;  %vm76_vm2 = vcmask 59392   ;;  %s149_s1 = inlined_call_operand.vmem [shape: f32[8,16], index: 1, kind: input, shape index: {}]   ;;  %s150_s0 = inlined_call_operand.vmem [shape: f32[32,16], index: 0, kind: input, shape index: {}]   ;;  %s151_s2 = inlined_call_operand.vmem [shape: f32[1,8], index: 2, kind: input, shape index: {}]   ;;  %s152_s3 = inlined_call_operand.vmem [shape: f32[27,8], index: 3, kind: output, shape index: {}]  }
   0x1   :  { %v22_v0 = vld [vmem:[%s149_s1] sm:$0xff]  ;;  %v16_v1 = vld [vmem:[%s150_s0 + $0x10] sm:$0xff]  ;;  %v17_v2 = vld [vmem:[%s150_s0 + $0x18] sm:$0xff] }
   0x2   :  { %88 = vmatpush.xpose.msk.msra.mxu2 %vm27_vm0, %v22_v0  ;;  %89 = vmatpush.xpose.msk.msra.mxu3 %vm27_vm0, %v22_v0  ;;  %v20_v3 = vmax.f32 %v16_v1, 0.0  ;;  %v21_v4 = vmax.f32 %v17_v2, 0.0  ;;  %v14_v5 = vld [vmem:[%s150_s0] sm:$0xff]  ;;  %v15_v6 = vld [vmem:[%s150_s0 + $0x8] sm:$0xff] }
   0x3   :  { %82 = vmatpush.xpose.msk.msra.mxu0 %vm27_vm0, %v22_v0  ;;  %87 = vmatpush.xpose.msk.msra.mxu1 %vm27_vm0, %v22_v0  ;;  %v18_v7 = vmax.f32 %v14_v5, 0.0  ;;  %v19_v8 = vmax.f32 %v15_v6, 0.0  ;;  %v90_v9 = vld [vmem:[%s151_s2] ss:$0 sm:$0xff] }
   0x5   :  { %85 = vmatmul.msk.f32.vlgmr.msra.gmra.mxu2 %vm27_vm0, %v20_v3  ;;  %86 = vmatmul.msk.f32.vlgmr.msra.gmra.mxu3 %vm27_vm0, %v21_v4 }
   0x6   :  { %83 = vmatmul.msk.f32.vlgmr.msra.gmra.mxu0 %vm27_vm0, %v18_v7  ;;  %84 = vmatmul.msk.f32.vlgmr.msra.gmra.mxu1 %vm27_vm0, %v19_v8 }
  0x83   :  { %v60_v10 = vpop.f32.mrf.mxu0  ;;  %v63_v11 = vpop.f32.mrf.mxu1 }
  0x84   :  { %v61_v12 = vadd.f32 %v90_v9, %v60_v10  ;;  %v64_v13 = vadd.f32 %v90_v9, %v63_v11 }
  0x86   :  { %73 = vst.msk [vmem:[%s152_s3] sm:$0xff] %vm72_vm1, %v61_v12 }
  0x87   :  { %74 = vst.msk [vmem:[%s152_s3 + $0x8] sm:$0xff] %vm72_vm1, %v64_v13 }
  0x88   :  { %v66_v14 = vpop.f32.mrf.mxu2  ;;  %v69_v15 = vpop.f32.mrf.mxu3 }
  0x89   :  { %v67_v16 = vadd.f32 %v90_v9, %v66_v14  ;;  %v70_v17 = vadd.f32 %v90_v9, %v69_v15 }
  0x8b   :  { %75 = vst.msk [vmem:[%s152_s3 + $0x10] sm:$0xff] %vm72_vm1, %v67_v16 }
  0x8c   :  { %77 = vst.msk [vmem:[%s152_s3 + $0x18] sm:$0x7] %vm76_vm2, %v70_v17 }

</bundles_post_ra>
